<compile_context>
chip_gen: v6e
topology: v6e:2x2x1
jax: 0.10.0
libtpu: 0.0.40
codegen_flags: <defaults>
</compile_context>

<pallas_src>
import functools

import jax
import jax.numpy as jnp
from jax import lax
from jax.experimental import pallas as pl
from jax.experimental.pallas import tpu as pltpu


# ---------------------------------------------------------------------------
# Kernel 1: conv-as-matmul (transposed, lane-dense) + per-block batch-stat partials
# ---------------------------------------------------------------------------
def _conv_stats_kernel(p_ref, w_ref, y_ref, sum_ref, ssq_ref):
    # (Cout, Kp) @ (Kp, tm) -> (Cout, tm): output tile is lane-dense (tm on lanes).
    y = jnp.dot(w_ref[...], p_ref[...], preferred_element_type=jnp.float32)
    y_ref[...] = y.astype(y_ref.dtype)

    # Per-block partial batch statistics (f32).  No resident accumulator, so the
    # grid axis can be "parallel".  The cross-lane reduce runs on the XLU slot
    # while the MXU is busy; zero-padded M columns contribute exactly 0.
    s = jnp.sum(y, axis=1, keepdims=True)        # (Cout, 1)
    q = jnp.sum(y * y, axis=1, keepdims=True)    # (Cout, 1)
    sum_ref[...] = jnp.broadcast_to(s, sum_ref.shape)
    ssq_ref[...] = jnp.broadcast_to(q, ssq_ref.shape)


# ---------------------------------------------------------------------------
# Kernel 2: BatchNorm (precomputed per-channel scale/shift) + ReLU6, lane-dense
# ---------------------------------------------------------------------------
def _bn_relu6_kernel(y_ref, scale_ref, shift_ref, o_ref):
    y = y_ref[...].astype(jnp.float32)           # (Cout, tm)
    s = scale_ref[:, 0:1]                        # (Cout, 1) -> lane broadcast
    b = shift_ref[:, 0:1]
    o_ref[...] = jnp.clip(y * s + b, 0.0, 6.0).astype(o_ref.dtype)


# ---------------------------------------------------------------------------
# Glue: im2col (transposed, K-major) — layout only, done once on the host side.
# ---------------------------------------------------------------------------
def _im2col_T(x, kd, kh, kw, stride, padding):
    N, Cin, D, H, W = x.shape
    xp = jnp.pad(x, ((0, 0), (0, 0), (padding,) * 2, (padding,) * 2, (padding,) * 2))
    Do = (D + 2 * padding - kd) // stride + 1
    Ho = (H + 2 * padding - kh) // stride + 1
    Wo = (W + 2 * padding - kw) // stride + 1
    slices = []
    for dz in range(kd):
        for dy in range(kh):
            for dx in range(kw):
                s = xp[:, :,
                       dz:dz + (Do - 1) * stride + 1:stride,
                       dy:dy + (Ho - 1) * stride + 1:stride,
                       dx:dx + (Wo - 1) * stride + 1:stride]
                slices.append(s)
    pat = jnp.stack(slices, axis=2)                  # (N, Cin, K3, Do, Ho, Wo)
    pat = jnp.transpose(pat, (1, 2, 0, 3, 4, 5))     # (Cin, K3, N, Do, Ho, Wo)
    K = Cin * kd * kh * kw
    M = N * Do * Ho * Wo
    # K ordering (Cin-major, then dz,dy,dx) matches weight.reshape(Cout, K).
    return pat.reshape(K, M), (Do, Ho, Wo)


def _round_up(x, m):
    return (x + m - 1) // m * m


def _pick_tm(M, Kp, Cout, budget_bytes=24 << 20):
    """Largest 128-multiple row tile whose double-buffered working set fits
    a conservative VMEM budget (safe on v5e/v6e 128 MiB and v7x 64 MiB)."""
    cap = max(128, _round_up(M, 128))
    tm = 128
    for cand in (256, 512, 1024, 2048, 4096):
        if cand > cap:
            break
        need = (2 * Kp * cand * 2        # bf16 patch tile, double-buffered
                + 2 * Cout * cand * 2    # bf16 y tile, double-buffered
                + 2 * 2 * Cout * 128 * 4 # f32 stat tiles
                + Cout * Kp * 2)         # resident bf16 weights
        if need > budget_bytes:
            break
        tm = cand
    return tm


# ---------------------------------------------------------------------------
# Forward pass of ConvLayer
# ---------------------------------------------------------------------------
def conv_layer_forward(x, weight, bias, gamma, beta, *, stride, padding, eps=1e-5):
    N, Cin, D, H, W = x.shape
    Cout, _, kd, kh, kw = weight.shape

    pT, (Do, Ho, Wo) = _im2col_T(x, kd, kh, kw, stride, padding)   # (K, M) f32
    K, M = pT.shape
    Kp = _round_up(K, 128)
    tm = _pick_tm(M, Kp, Cout)
    Mp = _round_up(M, tm)
    G = Mp // tm

    # Zero-pad K -> Kp (aligned lanes / MXU K) and M -> Mp (full tiles); the
    # padded patch columns produce y == 0 and therefore do not perturb the
    # batch statistics (no bias is added inside the kernel).
    pT = jnp.pad(pT, ((0, Kp - K), (0, Mp - M))).astype(jnp.bfloat16)
    w2 = jnp.pad(weight.reshape(Cout, K).astype(jnp.float32),
                 ((0, 0), (0, Kp - K))).astype(jnp.bfloat16)

    cparams = pltpu.CompilerParams(
        dimension_semantics=("parallel",),
        vmem_limit_bytes=32 * 1024 * 1024,
    )

    yT, sum_part, ssq_part = pl.pallas_call(
        _conv_stats_kernel,
        grid_spec=pltpu.PrefetchScalarGridSpec(
            num_scalar_prefetch=0,
            grid=(G,),
            in_specs=[
                pl.BlockSpec((Kp, tm), lambda i: (0, i)),
                pl.BlockSpec((Cout, Kp), lambda i: (0, 0)),
            ],
            out_specs=[
                pl.BlockSpec((Cout, tm), lambda i: (0, i)),
                pl.BlockSpec((Cout, 128), lambda i: (0, i)),
                pl.BlockSpec((Cout, 128), lambda i: (0, i)),
            ],
        ),
        out_shape=(
            jax.ShapeDtypeStruct((Cout, Mp), jnp.bfloat16),
            jax.ShapeDtypeStruct((Cout, G * 128), jnp.float32),
            jax.ShapeDtypeStruct((Cout, G * 128), jnp.float32),
        ),
        compiler_params=cparams,
    )(pT, w2)

    # Tiny cross-block reduction of the per-block partial statistics (host side).
    # NOTE: the conv bias cancels exactly under training-mode BatchNorm, so it is
    # intentionally never added (del bias from the hot loop).
    del bias
    sums = sum_part.reshape(Cout, G, 128)[:, :, 0].sum(axis=1)     # (Cout,)
    ssqs = ssq_part.reshape(Cout, G, 128)[:, :, 0].sum(axis=1)     # (Cout,)
    mean = sums / M
    # E[y^2] - E[y]^2 in f32; clamp tiny negative round-off before rsqrt.
    var = jnp.maximum(ssqs / M - mean * mean, 0.0)
    inv_std = lax.rsqrt(var + eps)
    scale = gamma.astype(jnp.float32) * inv_std                    # (Cout,)
    shift = beta.astype(jnp.float32) - mean * scale                # (Cout,)
    scale_b = jnp.broadcast_to(scale[:, None], (Cout, 128)).astype(jnp.float32)
    shift_b = jnp.broadcast_to(shift[:, None], (Cout, 128)).astype(jnp.float32)

    out_t = pl.pallas_call(
        _bn_relu6_kernel,
        grid_spec=pltpu.PrefetchScalarGridSpec(
            num_scalar_prefetch=0,
            grid=(G,),
            in_specs=[
                pl.BlockSpec((Cout, tm), lambda i: (0, i)),
                pl.BlockSpec((Cout, 128), lambda i: (0, 0)),
                pl.BlockSpec((Cout, 128), lambda i: (0, 0)),
            ],
            out_specs=pl.BlockSpec((Cout, tm), lambda i: (0, i)),
        ),
        out_shape=jax.ShapeDtypeStruct((Cout, Mp), jnp.float32),
        compiler_params=cparams,
    )(yT, scale_b, shift_b)

    o = out_t[:, :M].reshape(Cout, N, Do, Ho, Wo)                  # channel-major
    return jnp.transpose(o, (1, 0, 2, 3, 4))                       # back to NCDHW


# ---------------------------------------------------------------------------
# Pure-JAX reference (for correctness check)
# ---------------------------------------------------------------------------
def _reference(x, weight, bias, gamma, beta, *, stride, padding, eps=1e-5):
    y = lax.conv_general_dilated(
        x.astype(jnp.float32), weight.astype(jnp.float32),
        window_strides=(stride,) * 3,
        padding=[(padding, padding)] * 3,
        dimension_numbers=("NCDHW", "OIDHW", "NCDHW"))
    y = y + bias.reshape(1, -1, 1, 1, 1)
    mean = jnp.mean(y, axis=(0, 2, 3, 4), keepdims=True)
    var = jnp.var(y, axis=(0, 2, 3, 4), keepdims=True)
    yhat = (y - mean) * lax.rsqrt(var + eps)
    yhat = yhat * gamma.reshape(1, -1, 1, 1, 1) + beta.reshape(1, -1, 1, 1, 1)
    return jnp.clip(yhat, 0.0, 6.0)


if __name__ == "__main__":
    # ConvLayer(in_channels=4, out_channels=8, kernel_size=3, stride=1, padding=1)
    in_channels, out_channels, kernel_size, stride, padding = 4, 8, 3, 1, 1
    N, D, H, W = 2, 8, 8, 8

    key = jax.random.PRNGKey(0)
    kx, kw, kb, kg, kbt = jax.random.split(key, 5)

    x = jax.random.normal(kx, (N, in_channels, D, H, W), dtype=jnp.float32)

    fan_in = in_channels * kernel_size ** 3
    bound = 1.0 / (fan_in ** 0.5)
    weight = jax.random.uniform(
        kw, (out_channels, in_channels, kernel_size, kernel_size, kernel_size),
        minval=-bound, maxval=bound, dtype=jnp.float32)
    bias = jax.random.uniform(kb, (out_channels,), minval=-bound, maxval=bound,
                              dtype=jnp.float32)
    gamma = 1.0 + 0.1 * jax.random.normal(kg, (out_channels,), dtype=jnp.float32)
    beta = 0.1 * jax.random.normal(kbt, (out_channels,), dtype=jnp.float32)

    fwd = jax.jit(functools.partial(conv_layer_forward,
                                    stride=stride, padding=padding))
    out = fwd(x, weight, bias, gamma, beta)
    out = jax.block_until_ready(out)

    ref = _reference(x, weight, bias, gamma, beta,
                     stride=stride, padding=padding)
    assert out.shape == ref.shape == (N, out_channels, D, H, W)
    # bf16 MXU inputs + bf16 intermediate y -> tolerance loosened accordingly.
    assert jnp.allclose(out, ref, atol=3e-2, rtol=3e-2), \
        f"max abs err = {jnp.max(jnp.abs(out - ref))}"

    print("KERNEL_OK")
</pallas_src>

<mosaic_0001>
module attributes {stable_mosaic.version = 11 : i64} {
  func.func @_conv_stats_kernel(%arg0: i32, %arg1: memref<128x1024xbf16, #tpu.memory_space<vmem>>, %arg2: memref<8x128xbf16, #tpu.memory_space<vmem>>, %arg3: memref<8x1024xbf16, #tpu.memory_space<vmem>>, %arg4: memref<8x128xf32, #tpu.memory_space<vmem>>, %arg5: memref<8x128xf32, #tpu.memory_space<vmem>>) attributes {dimension_semantics = [#tpu.dimension_semantics<parallel>], iteration_bounds = array<i64: 1>, scalar_prefetch = 0 : i64, scratch_operands = 0 : i64, tpu.core_type = #tpu.core_type<tc>, window_params = [{transform_indices = @transform_0, window_bounds = array<i64: 128, 1024>}, {pipeline_mode = #tpu.pipeline_mode<synchronous>, transform_indices = @transform_1, window_bounds = array<i64: 8, 128>}, {transform_indices = @transform_2, window_bounds = array<i64: 8, 1024>}, {transform_indices = @transform_3, window_bounds = array<i64: 8, 128>}, {transform_indices = @transform_4, window_bounds = array<i64: 8, 128>}]} {
    %c0 = arith.constant 0 : index
    %c0_0 = arith.constant 0 : index
    %0 = vector.load %arg2[%c0, %c0_0] : memref<8x128xbf16, #tpu.memory_space<vmem>>, vector<8x128xbf16>
    %c0_1 = arith.constant 0 : index
    %c0_2 = arith.constant 0 : index
    %1 = vector.load %arg1[%c0_1, %c0_2] : memref<128x1024xbf16, #tpu.memory_space<vmem>>, vector<128x1024xbf16>
    %cst = arith.constant dense<0.000000e+00> : vector<8x1024xf32>
    %2 = tpu.matmul %0, %1, %cst {dimension_numbers = #tpu.dot_dimension_numbers<[1], [0], [0], [1], [0, 0, 1, 1], [], []>} : vector<8x128xbf16>, vector<128x1024xbf16>, vector<8x1024xf32> -> vector<8x1024xf32>
    %3 = arith.truncf %2 : vector<8x1024xf32> to vector<8x1024xbf16>
    %c0_3 = arith.constant 0 : index
    %c0_4 = arith.constant 0 : index
    %4 = vector.load %arg3[%c0_3, %c0_4] : memref<8x1024xbf16, #tpu.memory_space<vmem>>, vector<8x1024xbf16>
    tpu.vector_store %arg3[%c0_3, %c0_4], %3 {strides = array<i32>} : memref<8x1024xbf16, #tpu.memory_space<vmem>>, vector<8x1024xbf16>,
    %cst_5 = arith.constant dense<0.000000e+00> : vector<8xf32>
    %5 = vector.multi_reduction <add>, %2, %cst_5 [1] : vector<8x1024xf32> to vector<8xf32>
    %6 = vector.shape_cast %5 : vector<8xf32> to vector<8x1xf32>
    %7 = arith.mulf %2, %2 : vector<8x1024xf32>
    %cst_6 = arith.constant dense<0.000000e+00> : vector<8xf32>
    %8 = vector.multi_reduction <add>, %7, %cst_6 [1] : vector<8x1024xf32> to vector<8xf32>
    %9 = vector.shape_cast %8 : vector<8xf32> to vector<8x1xf32>
    %10 = vector.shape_cast %6 : vector<8x1xf32> to vector<8x1xf32>
    %11 = vector.broadcast %10 : vector<8x1xf32> to vector<8x128xf32>
    %c0_7 = arith.constant 0 : index
    %c0_8 = arith.constant 0 : index
    %12 = vector.load %arg4[%c0_7, %c0_8] : memref<8x128xf32, #tpu.memory_space<vmem>>, vector<8x128xf32>
    tpu.vector_store %arg4[%c0_7, %c0_8], %11 {strides = array<i32>} : memref<8x128xf32, #tpu.memory_space<vmem>>, vector<8x128xf32>,
    %13 = vector.shape_cast %9 : vector<8x1xf32> to vector<8x1xf32>
    %14 = vector.broadcast %13 : vector<8x1xf32> to vector<8x128xf32>
    %c0_9 = arith.constant 0 : index
    %c0_10 = arith.constant 0 : index
    %15 = vector.load %arg5[%c0_9, %c0_10] : memref<8x128xf32, #tpu.memory_space<vmem>>, vector<8x128xf32>
    tpu.vector_store %arg5[%c0_9, %c0_10], %14 {strides = array<i32>} : memref<8x128xf32, #tpu.memory_space<vmem>>, vector<8x128xf32>,
    return
  }
  func.func @transform_0(%arg0: i32) -> (i32, i32) {
    %c0_i32 = arith.constant 0 : i32
    %c0_i32_0 = arith.constant 0 : i32
    return %c0_i32, %arg0 : i32, i32
  }
  func.func @transform_1(%arg0: i32) -> (i32, i32) {
    %c0_i32 = arith.constant 0 : i32
    %c0_i32_0 = arith.constant 0 : i32
    %c0_i32_1 = arith.constant 0 : i32
    return %c0_i32, %c0_i32_0 : i32, i32
  }
  func.func @transform_2(%arg0: i32) -> (i32, i32) {
    %c0_i32 = arith.constant 0 : i32
    %c0_i32_0 = arith.constant 0 : i32
    return %c0_i32, %arg0 : i32, i32
  }
  func.func @transform_3(%arg0: i32) -> (i32, i32) {
    %c0_i32 = arith.constant 0 : i32
    %c0_i32_0 = arith.constant 0 : i32
    return %c0_i32, %arg0 : i32, i32
  }
  func.func @transform_4(%arg0: i32) -> (i32, i32) {
    %c0_i32 = arith.constant 0 : i32
    %c0_i32_0 = arith.constant 0 : i32
    return %c0_i32, %arg0 : i32, i32
  }
}

module attributes {stable_mosaic.version = 11 : i64} {
  func.func @_bn_relu6_kernel(%arg0: i32, %arg1: memref<8x1024xbf16, #tpu.memory_space<vmem>>, %arg2: memref<8x128xf32, #tpu.memory_space<vmem>>, %arg3: memref<8x128xf32, #tpu.memory_space<vmem>>, %arg4: memref<8x1024xf32, #tpu.memory_space<vmem>>) attributes {dimension_semantics = [#tpu.dimension_semantics<parallel>], iteration_bounds = array<i64: 1>, scalar_prefetch = 0 : i64, scratch_operands = 0 : i64, tpu.core_type = #tpu.core_type<tc>, window_params = [{transform_indices = @transform_0, window_bounds = array<i64: 8, 1024>}, {pipeline_mode = #tpu.pipeline_mode<synchronous>, transform_indices = @transform_1, window_bounds = array<i64: 8, 128>}, {pipeline_mode = #tpu.pipeline_mode<synchronous>, transform_indices = @transform_2, window_bounds = array<i64: 8, 128>}, {transform_indices = @transform_3, window_bounds = array<i64: 8, 1024>}]} {
    %c0 = arith.constant 0 : index
    %c0_0 = arith.constant 0 : index
    %0 = vector.load %arg1[%c0, %c0_0] : memref<8x1024xbf16, #tpu.memory_space<vmem>>, vector<8x1024xbf16>
    %1 = arith.extf %0 : vector<8x1024xbf16> to vector<8x1024xf32>
    %c0_1 = arith.constant 0 : index
    %c0_2 = arith.constant 0 : index
    %2 = vector.load %arg2[%c0_1, %c0_2] : memref<8x128xf32, #tpu.memory_space<vmem>>, vector<8x1xf32>
    %c0_3 = arith.constant 0 : index
    %c0_4 = arith.constant 0 : index
    %3 = vector.load %arg3[%c0_3, %c0_4] : memref<8x128xf32, #tpu.memory_space<vmem>>, vector<8x1xf32>
    %4 = vector.broadcast %2 : vector<8x1xf32> to vector<8x1024xf32>
    %5 = arith.mulf %1, %4 : vector<8x1024xf32>
    %6 = vector.broadcast %3 : vector<8x1xf32> to vector<8x1024xf32>
    %7 = arith.addf %5, %6 : vector<8x1024xf32>
    %cst = arith.constant 0.000000e+00 : f32
    %cst_5 = arith.constant 6.000000e+00 : f32
    %8 = vector.broadcast %cst : f32 to vector<8x1024xf32>
    %9 = arith.maximumf %8, %7 : vector<8x1024xf32>
    %10 = vector.broadcast %cst_5 : f32 to vector<8x1024xf32>
    %11 = arith.minimumf %10, %9 : vector<8x1024xf32>
    %c0_6 = arith.constant 0 : index
    %c0_7 = arith.constant 0 : index
    %12 = vector.load %arg4[%c0_6, %c0_7] : memref<8x1024xf32, #tpu.memory_space<vmem>>, vector<8x1024xf32>
    tpu.vector_store %arg4[%c0_6, %c0_7], %11 {strides = array<i32>} : memref<8x1024xf32, #tpu.memory_space<vmem>>, vector<8x1024xf32>,
    return
  }
  func.func @transform_0(%arg0: i32) -> (i32, i32) {
    %c0_i32 = arith.constant 0 : i32
    %c0_i32_0 = arith.constant 0 : i32
    return %c0_i32, %arg0 : i32, i32
  }
  func.func @transform_1(%arg0: i32) -> (i32, i32) {
    %c0_i32 = arith.constant 0 : i32
    %c0_i32_0 = arith.constant 0 : i32
    %c0_i32_1 = arith.constant 0 : i32
    return %c0_i32, %c0_i32_0 : i32, i32
  }
  func.func @transform_2(%arg0: i32) -> (i32, i32) {
    %c0_i32 = arith.constant 0 : i32
    %c0_i32_0 = arith.constant 0 : i32
    %c0_i32_1 = arith.constant 0 : i32
    return %c0_i32, %c0_i32_0 : i32, i32
  }
  func.func @transform_3(%arg0: i32) -> (i32, i32) {
    %c0_i32 = arith.constant 0 : i32
    %c0_i32_0 = arith.constant 0 : i32
    return %c0_i32, %arg0 : i32, i32
  }
}

</mosaic_0001>

<bundles_post_ra>
// kernel: conv_layer_forward.3
= control target key start
LH: loop header
LB: loop body
LE: loop exit
PB: predicated region body
PF: predicated region fallthrough
CT: control target
= control target key end

     0   :  { %v84_v0 = vmov 0   ;;  %s147_s1 = inlined_call_operand.vmem [shape: f32[8,128], index: 1, kind: input, shape index: {}]   ;;  %s148_s2 = inlined_call_operand.vmem [shape: f32[8,128], index: 2, kind: input, shape index: {}]   ;;  %s149_s0 = inlined_call_operand.vmem [shape: bf16[8,1024], index: 0, kind: input, shape index: {}]   ;;  %s150_s3 = inlined_call_operand.vmem [shape: f32[8,1024], index: 3, kind: output, shape index: {}]  }
   0x1   :  { %83 = vset.pattern.permute.xlu0 %v84_v0  ;;  %v26_v1 = vld [vmem:[%s147_s1] sm:$0xff]  ;;  %v15_v4 = vld [vmem:[%s149_s0 + $0x8] sm:$0xff]  ;;  %v16_v5 = vld [vmem:[%s149_s0 + $0x10] sm:$0xff] }
   0x2   :  { %30 = vperm.xlu0 %83, %v26_v1   ;;  %v27_v2 = vld [vmem:[%s148_s2] sm:$0xff]  ;;  %v17_v6 = vld [vmem:[%s149_s0 + $0x18] sm:$0xff]  ;;  %v20_v9 = vunpack.c.l.bf16 %v15_v4  ;;  %v21_v10 = vunpack.c.h.bf16 %v15_v4  ;;  %v22_v12 = vunpack.c.l.bf16 %v16_v5  ;;  %v23_v13 = vunpack.c.h.bf16 %v16_v5 }
   0x3   :  { %v14_v3 = vld [vmem:[%s149_s0] sm:$0xff]  ;;  %v24_v14 = vunpack.c.l.bf16 %v17_v6  ;;  %v25_v15 = vunpack.c.h.bf16 %v17_v6 }
   0x4   :  { %v18_v7 = vunpack.c.l.bf16 %v14_v3  ;;  %v19_v8 = vunpack.c.h.bf16 %v14_v3 }
   0x6   :  { %43 = vperm.xlu0 %83, %v27_v2  }
  0x7d   :  { %v31_v11 = vpop.permute.xlu0 %30 }
  0x7e   :  { %v33_v16 = vmul.f32 %v31_v11, %v18_v7  ;;  %v34_v17 = vmul.f32 %v31_v11, %v19_v8  ;;  %v35_v18 = vmul.f32 %v31_v11, %v20_v9  ;;  %v36_v19 = vmul.f32 %v31_v11, %v21_v10 }
  0x7f   :  { %v37_v21 = vmul.f32 %v31_v11, %v22_v12  ;;  %v38_v22 = vmul.f32 %v31_v11, %v23_v13  ;;  %v39_v23 = vmul.f32 %v31_v11, %v24_v14  ;;  %v40_v24 = vmul.f32 %v31_v11, %v25_v15 }
  0x81   :  { %v44_v20 = vpop.permute.xlu0 %43 }
  0x82   :  { %v46_v25 = vadd.f32 %v44_v20, %v33_v16  ;;  %v47_v26 = vadd.f32 %v44_v20, %v34_v17  ;;  %v48_v27 = vadd.f32 %v44_v20, %v35_v18  ;;  %v49_v28 = vadd.f32 %v44_v20, %v36_v19 }
  0x83   :  { %v50_v29 = vadd.f32 %v44_v20, %v37_v21  ;;  %v51_v30 = vadd.f32 %v44_v20, %v38_v22  ;;  %v52_v31 = vadd.f32 %v44_v20, %v39_v23  ;;  %v53_v32 = vadd.f32 %v44_v20, %v40_v24 }
  0x84   :  { %v54_v33 = vmax.f32 %v46_v25, 0.0  ;;  %v55_v34 = vmax.f32 %v47_v26, 0.0  ;;  %v56_v35 = vmax.f32 %v48_v27, 0.0  ;;  %v57_v36 = vmax.f32 %v49_v28, 0.0 }
  0x85   :  { %v58_v37 = vmax.f32 %v50_v29, 0.0  ;;  %v59_v38 = vmax.f32 %v51_v30, 0.0  ;;  %v60_v39 = vmax.f32 %v52_v31, 0.0  ;;  %v61_v40 = vmax.f32 %v53_v32, 0.0 }
  0x86   :  { %v62_v41 = vmin.f32 %v54_v33, 6.0  ;;  %v63_v42 = vmin.f32 %v55_v34, 6.0  ;;  %v64_v43 = vmin.f32 %v56_v35, 6.0  ;;  %v65_v44 = vmin.f32 %v57_v36, 6.0 }
  0x87   :  { %v66_v45 = vmin.f32 %v58_v37, 6.0  ;;  %v67_v46 = vmin.f32 %v59_v38, 6.0  ;;  %v68_v47 = vmin.f32 %v60_v39, 6.0  ;;  %v69_v48 = vmin.f32 %v61_v40, 6.0 }
  0x88   :  { %70 = vst [vmem:[%s150_s3] sm:$0xff] %v62_v41  ;;  %71 = vst [vmem:[%s150_s3 + $0x8] sm:$0xff] %v63_v42 }
  0x89   :  { %72 = vst [vmem:[%s150_s3 + $0x10] sm:$0xff] %v64_v43  ;;  %73 = vst [vmem:[%s150_s3 + $0x18] sm:$0xff] %v65_v44 }
  0x8a   :  { %74 = vst [vmem:[%s150_s3 + $0x20] sm:$0xff] %v66_v45  ;;  %75 = vst [vmem:[%s150_s3 + $0x28] sm:$0xff] %v67_v46 }
  0x8b   :  { %76 = vst [vmem:[%s150_s3 + $0x30] sm:$0xff] %v68_v47  ;;  %77 = vst [vmem:[%s150_s3 + $0x38] sm:$0xff] %v69_v48 }

// kernel: conv_layer_forward.2
= control target key start
LH: loop header
LB: loop body
LE: loop exit
PB: predicated region body
PF: predicated region fallthrough
CT: control target
= control target key end

     0   :  { %v713_v3 = vmov 0   ;;  %s962_s0 = inlined_call_operand.vmem [shape: bf16[128,1024], index: 0, kind: input, shape index: {}]   ;;  %s963_s1 = inlined_call_operand.vmem [shape: bf16[8,128], index: 1, kind: input, shape index: {}]   ;;  %s964_s2 = inlined_call_operand.vmem [shape: bf16[8,1024], index: 2, kind: output, shape index: {0}]   ;;  %s965_s3 = inlined_call_operand.vmem [shape: f32[8,128], index: 3, kind: output, shape index: {1}]   ;;  %s966_s4 = inlined_call_operand.vmem [shape: f32[8,128], index: 4, kind: output, shape index: {2}]  }
   0x1   :  { %v72_v0 = vld [vmem:[%s962_s0 + $0x1c0] sm:$0xff]  ;;  %v73_v2 = vld [vmem:[%s962_s0 + $0x1c8] sm:$0xff]  ;;  %432 = vmatprep.mubr.bf16.mxu0 %v713_v3  ;;  %473 = vmatprep.mubr.bf16.mxu1 %v713_v3  ;;  %v74_v63 = vld [vmem:[%s962_s0 + $0x1d0] sm:$0xff] }
   0x2   :  { %v76_v1 = vld [vmem:[%s962_s0 + $0x1e0] sm:$0xff]  ;;  %v77_v5 = vld [vmem:[%s962_s0 + $0x1e8] sm:$0xff] }
   0x3   :  { %v697_v4 = vcombine.high %v72_v0, %v76_v1  ;;  %v696_v6 = vcombine.low %v72_v0, %v76_v1  ;;  %v64_v7 = vld [vmem:[%s962_s0 + $0x180] sm:$0xff]  ;;  %v699_v9 = vcombine.high %v73_v2, %v77_v5  ;;  %v698_v10 = vcombine.low %v73_v2, %v77_v5  ;;  %v65_v12 = vld [vmem:[%s962_s0 + $0x188] sm:$0xff]  ;;  %v78_v0 = vld [vmem:[%s962_s0 + $0x1f0] sm:$0xff] }
   0x4   :  { %v68_v8 = vld [vmem:[%s962_s0 + $0x1a0] sm:$0xff]  ;;  %v69_v13 = vld [vmem:[%s962_s0 + $0x1a8] sm:$0xff]  ;;  %v75_v1 = vld [vmem:[%s962_s0 + $0x1d8] sm:$0xff] }
   0x5   :  { %v689_v11 = vcombine.high %v64_v7, %v68_v8  ;;  %v56_v14 = vld [vmem:[%s962_s0 + $0x140] sm:$0xff]  ;;  %400 = vmatprep.subr.bf16.mxu0 %v697_v4  ;;  %v691_v15 = vcombine.high %v65_v12, %v69_v13  ;;  %v57_v17 = vld [vmem:[%s962_s0 + $0x148] sm:$0xff]  ;;  %441 = vmatprep.subr.bf16.mxu1 %v699_v9  ;;  %v688_v19 = vcombine.low %v64_v7, %v68_v8  ;;  %v79_v2 = vld [vmem:[%s962_s0 + $0x1f8] sm:$0xff] }
   0x6   :  { %v60_v16 = vld [vmem:[%s962_s0 + $0x160] sm:$0xff]  ;;  %v61_v18 = vld [vmem:[%s962_s0 + $0x168] sm:$0xff]  ;;  %401 = vmatpush1.bf16.msra.mxu0 %v696_v6  ;;  %442 = vmatpush1.bf16.msra.mxu1 %v698_v10  ;;  %v690_v20 = vcombine.low %v65_v12, %v69_v13  ;;  %v701_v6 = vcombine.high %v74_v63, %v78_v0  ;;  %v703_v7 = vcombine.high %v75_v1, %v79_v2  ;;  %v66_v8 = vld [vmem:[%s962_s0 + $0x190] sm:$0xff] }
   0x7   :  { %402 = vmatprep.subr.bf16.mxu0 %v689_v11  ;;  %v681_v21 = vcombine.high %v56_v14, %v60_v16  ;;  %443 = vmatprep.subr.bf16.mxu1 %v691_v15  ;;  %v683_v22 = vcombine.high %v57_v17, %v61_v18  ;;  %v48_v23 = vld [vmem:[%s962_s0 + $0x100] sm:$0xff]  ;;  %v49_v25 = vld [vmem:[%s962_s0 + $0x108] sm:$0xff]  ;;  %v680_v27 = vcombine.low %v56_v14, %v60_v16  ;;  %v70_v9 = vld [vmem:[%s962_s0 + $0x1b0] sm:$0xff] }
   0x8   :  { %v52_v24 = vld [vmem:[%s962_s0 + $0x120] sm:$0xff]  ;;  %v53_v26 = vld [vmem:[%s962_s0 + $0x128] sm:$0xff]  ;;  %v682_v28 = vcombine.low %v57_v17, %v61_v18  ;;  %v67_v10 = vld [vmem:[%s962_s0 + $0x198] sm:$0xff]  ;;  %v700_v13 = vcombine.low %v74_v63, %v78_v0  ;;  %v702_v14 = vcombine.low %v75_v1, %v79_v2  ;;  %v693_v15 = vcombine.high %v66_v8, %v70_v9 }
   0x9   :  { %v673_v29 = vcombine.high %v48_v23, %v52_v24  ;;  %v675_v30 = vcombine.high %v49_v25, %v53_v26  ;;  %v40_v31 = vld [vmem:[%s962_s0 + $0xc0] sm:$0xff]  ;;  %v41_v33 = vld [vmem:[%s962_s0 + $0xc8] sm:$0xff]  ;;  %v672_v35 = vcombine.low %v48_v23, %v52_v24  ;;  %v674_v36 = vcombine.low %v49_v25, %v53_v26  ;;  %v71_v11 = vld [vmem:[%s962_s0 + $0x1b8] sm:$0xff] }
   0xa   :  { %403 = vmatpush1.bf16.msra.mxu0 %v688_v19  ;;  %444 = vmatpush1.bf16.msra.mxu1 %v690_v20  ;;  %v44_v32 = vld [vmem:[%s962_s0 + $0xe0] sm:$0xff]  ;;  %v45_v34 = vld [vmem:[%s962_s0 + $0xe8] sm:$0xff]  ;;  %v695_v16 = vcombine.high %v67_v10, %v71_v11  ;;  %v58_v17 = vld [vmem:[%s962_s0 + $0x150] sm:$0xff] }
   0xb   :  { %404 = vmatprep.subr.bf16.mxu0 %v681_v21  ;;  %445 = vmatprep.subr.bf16.mxu1 %v683_v22  ;;  %v665_v37 = vcombine.high %v40_v31, %v44_v32  ;;  %v667_v38 = vcombine.high %v41_v33, %v45_v34  ;;  %v32_v39 = vld [vmem:[%s962_s0 + $0x80] sm:$0xff]  ;;  %v33_v41 = vld [vmem:[%s962_s0 + $0x88] sm:$0xff]  ;;  %v664_v43 = vcombine.low %v40_v31, %v44_v32  ;;  %v62_v18 = vld [vmem:[%s962_s0 + $0x170] sm:$0xff] }
   0xc   :  { %v36_v40 = vld [vmem:[%s962_s0 + $0xa0] sm:$0xff]  ;;  %v37_v42 = vld [vmem:[%s962_s0 + $0xa8] sm:$0xff]  ;;  %v666_v44 = vcombine.low %v41_v33, %v45_v34  ;;  %v59_v19 = vld [vmem:[%s962_s0 + $0x158] sm:$0xff]  ;;  %v692_v21 = vcombine.low %v66_v8, %v70_v9  ;;  %v694_v22 = vcombine.low %v67_v10, %v71_v11  ;;  %v685_v23 = vcombine.high %v58_v17, %v62_v18 }
   0xd   :  { %v657_v45 = vcombine.high %v32_v39, %v36_v40  ;;  %v659_v46 = vcombine.high %v33_v41, %v37_v42  ;;  %v24_v47 = vld [vmem:[%s962_s0 + $0x40] sm:$0xff]  ;;  %v25_v49 = vld [vmem:[%s962_s0 + $0x48] sm:$0xff]  ;;  %v656_v51 = vcombine.low %v32_v39, %v36_v40  ;;  %v658_v52 = vcombine.low %v33_v41, %v37_v42  ;;  %v63_v20 = vld [vmem:[%s962_s0 + $0x178] sm:$0xff] }
   0xe   :  { %405 = vmatpush1.bf16.msra.mxu0 %v680_v27  ;;  %446 = vmatpush1.bf16.msra.mxu1 %v682_v28  ;;  %v28_v48 = vld [vmem:[%s962_s0 + $0x60] sm:$0xff]  ;;  %v29_v50 = vld [vmem:[%s962_s0 + $0x68] sm:$0xff]  ;;  %v687_v24 = vcombine.high %v59_v19, %v63_v20  ;;  %v50_v25 = vld [vmem:[%s962_s0 + $0x110] sm:$0xff] }
   0xf   :  { %406 = vmatprep.subr.bf16.mxu0 %v673_v29  ;;  %447 = vmatprep.subr.bf16.mxu1 %v675_v30  ;;  %v649_v53 = vcombine.high %v24_v47, %v28_v48  ;;  %v651_v54 = vcombine.high %v25_v49, %v29_v50  ;;  %v16_v55 = vld [vmem:[%s962_s0] sm:$0xff]  ;;  %v17_v57 = vld [vmem:[%s962_s0 + $0x8] sm:$0xff]  ;;  %v648_v59 = vcombine.low %v24_v47, %v28_v48  ;;  %v54_v26 = vld [vmem:[%s962_s0 + $0x130] sm:$0xff] }
  0x10   :  { %v20_v56 = vld [vmem:[%s962_s0 + $0x20] sm:$0xff]  ;;  %v21_v58 = vld [vmem:[%s962_s0 + $0x28] sm:$0xff]  ;;  %v650_v60 = vcombine.low %v25_v49, %v29_v50  ;;  %v51_v27 = vld [vmem:[%s962_s0 + $0x118] sm:$0xff]  ;;  %v684_v29 = vcombine.low %v58_v17, %v62_v18  ;;  %v686_v30 = vcombine.low %v59_v19, %v63_v20  ;;  %v677_v31 = vcombine.high %v50_v25, %v54_v26 }
  0x11   :  { %v641_v61 = vcombine.high %v16_v55, %v20_v56  ;;  %v643_v62 = vcombine.high %v17_v57, %v21_v58  ;;  %v640_v4 = vcombine.low %v16_v55, %v20_v56  ;;  %v642_v5 = vcombine.low %v17_v57, %v21_v58  ;;  %v864_v12 = vld [vmem:[%s963_s1] sm:$0xf]  ;;  %v55_v28 = vld [vmem:[%s962_s0 + $0x138] sm:$0xff]  ;;  %v42_v33 = vld [vmem:[%s962_s0 + $0xd0] sm:$0xff] }
  0x12   :  { %407 = vmatpush1.bf16.msra.mxu0 %v672_v35  ;;  %448 = vmatpush1.bf16.msra.mxu1 %v674_v36  ;;  %v679_v32 = vcombine.high %v51_v27, %v55_v28  ;;  %v46_v34 = vld [vmem:[%s962_s0 + $0xf0] sm:$0xff]  ;;  %v47_v35 = vld [vmem:[%s962_s0 + $0xf8] sm:$0xff]  ;;  %v676_v36 = vcombine.low %v50_v25, %v54_v26 }
  0x13   :  { %408 = vmatprep.subr.bf16.mxu0 %v665_v37  ;;  %449 = vmatprep.subr.bf16.mxu1 %v667_v38  ;;  %v678_v37 = vcombine.low %v51_v27, %v55_v28  ;;  %v669_v38 = vcombine.high %v42_v33, %v46_v34  ;;  %v34_v40 = vld [vmem:[%s962_s0 + $0x90] sm:$0xff]  ;;  %v35_v42 = vld [vmem:[%s962_s0 + $0x98] sm:$0xff] }
  0x14   :  { %v38_v41 = vld [vmem:[%s962_s0 + $0xb0] sm:$0xff]  ;;  %v27_v50 = vld [vmem:[%s962_s0 + $0x58] sm:$0xff] }
  0x15   :  { %v26_v48 = vld [vmem:[%s962_s0 + $0x50] sm:$0xff]  ;;  %v19_v58 = vld [vmem:[%s962_s0 + $0x18] sm:$0xff] }
  0x16   :  { %409 = vmatpush1.bf16.msra.mxu0 %v664_v43  ;;  %450 = vmatpush1.bf16.msra.mxu1 %v666_v44  ;;  %v39_v43 = vld [vmem:[%s962_s0 + $0xb8] sm:$0xff]  ;;  %v668_v44 = vcombine.low %v42_v33, %v46_v34  ;;  %v30_v49 = vld [vmem:[%s962_s0 + $0x70] sm:$0xff] }
  0x17   :  { %410 = vmatprep.subr.bf16.mxu0 %v657_v45  ;;  %451 = vmatprep.subr.bf16.mxu1 %v659_v46  ;;  %v661_v46 = vcombine.high %v34_v40, %v38_v41  ;;  %v663_v47 = vcombine.high %v35_v42, %v39_v43  ;;  %v18_v56 = vld [vmem:[%s962_s0 + $0x10] sm:$0xff] }
  0x18   :  { %v22_v57 = vld [vmem:[%s962_s0 + $0x30] sm:$0xff] }
  0x19   :  { %v644_v0 = vcombine.low %v18_v56, %v22_v57 }
  0x1a   :  { %411 = vmatpush1.bf16.msra.mxu0 %v656_v51  ;;  %452 = vmatpush1.bf16.msra.mxu1 %v658_v52  ;;  %v31_v51 = vld [vmem:[%s962_s0 + $0x78] sm:$0xff]  ;;  %v660_v52 = vcombine.low %v34_v40, %v38_v41 }
  0x1b   :  { %412 = vmatprep.subr.bf16.mxu0 %v649_v53  ;;  %453 = vmatprep.subr.bf16.mxu1 %v651_v54  ;;  %v662_v53 = vcombine.low %v35_v42, %v39_v43  ;;  %v653_v54 = vcombine.high %v26_v48, %v30_v49  ;;  %v655_v55 = vcombine.high %v27_v50, %v31_v51 }
  0x1e   :  { %413 = vmatpush1.bf16.msra.mxu0 %v648_v59  ;;  %454 = vmatpush1.bf16.msra.mxu1 %v650_v60  ;;  %v23_v59 = vld [vmem:[%s962_s0 + $0x38] sm:$0xff]  ;;  %v652_v60 = vcombine.low %v26_v48, %v30_v49 }
  0x1f   :  { %414 = vmatprep.subr.bf16.mxu0 %v641_v61  ;;  %455 = vmatprep.subr.bf16.mxu1 %v643_v62  ;;  %v654_v61 = vcombine.low %v27_v50, %v31_v51  ;;  %v645_v62 = vcombine.high %v18_v56, %v22_v57  ;;  %v647_v63 = vcombine.high %v19_v58, %v23_v59 }
  0x20   :  { %v646_v1 = vcombine.low %v19_v58, %v23_v59 }
  0x22   :  { %415 = vmatpush1.bf16.msra.mxu0 %v640_v4  ;;  %456 = vmatpush1.bf16.msra.mxu1 %v642_v5 }
  0x23   :  { %482 = vmatprep.subr.bf16.mxu0 %v701_v6  ;;  %523 = vmatprep.subr.bf16.mxu1 %v703_v7 }
  0x25   :  { %433 = vmatmul.mubr.bf16.vlgmr.msra.gmra.mxu0 %v864_v12  ;;  %474 = vmatmul.mubr.bf16.vlgmr.msra.gmra.mxu1 %v864_v12 }
  0x26   :  { %483 = vmatpush1.bf16.msra.mxu0 %v700_v13  ;;  %524 = vmatpush1.bf16.msra.mxu1 %v702_v14 }
  0x27   :  { %484 = vmatprep.subr.bf16.mxu0 %v693_v15  ;;  %525 = vmatprep.subr.bf16.mxu1 %v695_v16 }
  0x28   :  { %514 = vmatprep.mubr.bf16.mxu0 %v713_v3  ;;  %555 = vmatprep.mubr.bf16.mxu1 %v713_v3  ;;  %v43_v3 = vld [vmem:[%s962_s0 + $0xd8] sm:$0xff] }
  0x29   :  { %v671_v39 = vcombine.high %v43_v3, %v47_v35  ;;  %v670_v45 = vcombine.low %v43_v3, %v47_v35 }
  0x2a   :  { %485 = vmatpush1.bf16.msra.mxu0 %v692_v21  ;;  %526 = vmatpush1.bf16.msra.mxu1 %v694_v22 }
  0x2b   :  { %486 = vmatprep.subr.bf16.mxu0 %v685_v23  ;;  %527 = vmatprep.subr.bf16.mxu1 %v687_v24 }
  0x2e   :  { %487 = vmatpush1.bf16.msra.mxu0 %v684_v29  ;;  %528 = vmatpush1.bf16.msra.mxu1 %v686_v30 }
  0x2f   :  { %488 = vmatprep.subr.bf16.mxu0 %v677_v31  ;;  %529 = vmatprep.subr.bf16.mxu1 %v679_v32 }
  0x32   :  { %489 = vmatpush1.bf16.msra.mxu0 %v676_v36  ;;  %530 = vmatpush1.bf16.msra.mxu1 %v678_v37 }
  0x33   :  { %490 = vmatprep.subr.bf16.mxu0 %v669_v38  ;;  %531 = vmatprep.subr.bf16.mxu1 %v671_v39 }
  0x36   :  { %491 = vmatpush1.bf16.msra.mxu0 %v668_v44  ;;  %532 = vmatpush1.bf16.msra.mxu1 %v670_v45 }
  0x37   :  { %492 = vmatprep.subr.bf16.mxu0 %v661_v46  ;;  %533 = vmatprep.subr.bf16.mxu1 %v663_v47 }
  0x3a   :  { %493 = vmatpush1.bf16.msra.mxu0 %v660_v52  ;;  %534 = vmatpush1.bf16.msra.mxu1 %v662_v53 }
  0x3b   :  { %494 = vmatprep.subr.bf16.mxu0 %v653_v54  ;;  %535 = vmatprep.subr.bf16.mxu1 %v655_v55 }
  0x3e   :  { %495 = vmatpush1.bf16.msra.mxu0 %v652_v60  ;;  %536 = vmatpush1.bf16.msra.mxu1 %v654_v61 }
  0x3f   :  { %496 = vmatprep.subr.bf16.mxu0 %v645_v62  ;;  %537 = vmatprep.subr.bf16.mxu1 %v647_v63 }
  0x42   :  { %497 = vmatpush1.bf16.msra.mxu0 %v644_v0  ;;  %538 = vmatpush1.bf16.msra.mxu1 %v646_v1 }
  0x45   :  { %515 = vmatmul.mubr.bf16.vlgmr.msra.gmra.mxu0 %v864_v12  ;;  %556 = vmatmul.mubr.bf16.vlgmr.msra.gmra.mxu1 %v864_v12 }
  0xe5   :  { %v434_v2 = vpop.f32.mrf.mxu0  ;;  %v475_v4 = vpop.f32.mrf.mxu1 }
  0xe6   :  { %v609_v14 = vmul.f32 %v434_v2, %v434_v2  ;;  %v611_v16 = vmul.f32 %v475_v4, %v475_v4 }
  0xe7   :  { %v436_v5 = vpop.f32.mrf.mxu0  ;;  %v477_v7 = vpop.f32.mrf.mxu1 }
  0xe8   :  { %v708_v6 = vpack.c.bf16 %v436_v5, %v434_v2  ;;  %v709_v8 = vpack.c.bf16 %v477_v7, %v475_v4  ;;  %v610_v12 = vmul.f32 %v436_v5, %v436_v5  ;;  %v600_v15 = vadd.f32 %v436_v5, %v434_v2 }
  0xe9   :  { %v438_v9 = vpop.f32.mrf.mxu0  ;;  %v479_v10 = vpop.f32.mrf.mxu1  ;;  %v612_v19 = vmul.f32 %v477_v7, %v477_v7 }
  0xea   :  { %596 = vst [vmem:[%s964_s2] sm:$0xff] %v708_v6  ;;  %597 = vst [vmem:[%s964_s2 + $0x8] sm:$0xff] %v709_v8  ;;  %v617_v17 = vadd.f32 %v610_v12, %v609_v14  ;;  %v601_v18 = vadd.f32 %v600_v15, %v475_v4 }
  0xeb   :  { %v439_v11 = vpop.f32.mrf.mxu0  ;;  %v480_v13 = vpop.f32.mrf.mxu1 }
  0xec   :  { %v618_v20 = vadd.f32 %v617_v17, %v611_v16  ;;  %v602_v21 = vadd.f32 %v601_v18, %v477_v7 }
  0xee   :  { %v619_v23 = vadd.f32 %v618_v20, %v612_v19 }
 0x105   :  { %v516_v22 = vpop.f32.mrf.mxu0  ;;  %v557_v26 = vpop.f32.mrf.mxu1 }
 0x106   :  { %v603_v24 = vadd.f32 %v602_v21, %v516_v22  ;;  %v613_v25 = vmul.f32 %v516_v22, %v516_v22  ;;  %v615_v27 = vmul.f32 %v557_v26, %v557_v26 }
 0x107   :  { %v518_v28 = vpop.f32.mrf.mxu0  ;;  %v559_v33 = vpop.f32.mrf.mxu1 }
 0x108   :  { %v620_v29 = vadd.f32 %v619_v23, %v613_v25  ;;  %v710_v30 = vpack.c.bf16 %v518_v28, %v516_v22  ;;  %v604_v31 = vadd.f32 %v603_v24, %v518_v28  ;;  %v614_v32 = vmul.f32 %v518_v28, %v518_v28 }
 0x109   :  { %v711_v34 = vpack.c.bf16 %v559_v33, %v557_v26  ;;  %v520_v3 = vpop.f32.mrf.mxu0  ;;  %v561_v35 = vpop.f32.mrf.mxu1  ;;  %v616_v42 = vmul.f32 %v559_v33, %v559_v33 }
 0x10a   :  { %598 = vst [vmem:[%s964_s2 + $0x10] sm:$0xff] %v710_v30  ;;  %v605_v36 = vadd.f32 %v604_v31, %v557_v26  ;;  %v621_v37 = vadd.f32 %v620_v29, %v614_v32 }
 0x10b   :  { %599 = vst [vmem:[%s964_s2 + $0x18] sm:$0xff] %v711_v34  ;;  %v521_v38 = vpop.f32.mrf.mxu0  ;;  %v562_v39 = vpop.f32.mrf.mxu1 }
 0x10c   :  { %v606_v40 = vadd.f32 %v605_v36, %v559_v33  ;;  %v622_v41 = vadd.f32 %v621_v37, %v615_v27 }
 0x10e   :  { %607 = vadd.xlane.f32.xlu0 %v606_v40  ;;  %v623_v43 = vadd.f32 %v622_v41, %v616_v42 }
 0x112   :  { %624 = vadd.xlane.f32.xlu0 %v623_v43 }
 0x197   :  { %v608_v44 = vpop.xlane.xlu0 %607 }
 0x198   :  { %626 = vst [vmem:[%s965_s3] sm:$0xff] %v608_v44 }
 0x19b   :  { %v625_v45 = vpop.xlane.xlu0 %624 }
 0x19c   :  { %627 = vst [vmem:[%s966_s4] sm:$0xff] %v625_v45 }

</bundles_post_ra>
